<compile_context>
chip_gen: v5e
topology: v5e:2x2
jax: 0.10.0
libtpu: 0.0.40
codegen_flags: <defaults>
</compile_context>

<pallas_src>
import functools

import jax
import jax.numpy as jnp
from jax.experimental import pallas as pl
from jax.experimental.pallas import tpu as pltpu


def _se_kernel(x_ref, w1t_ref, b1_ref, w2t_ref, b2_ref, o_ref, *, inv_hw):
    # x_ref: (Bt, C, HW)   w1t_ref: (C, Cr)   b1_ref: (1, Cr)
    # w2t_ref: (Cr, C)     b2_ref: (1, C)     o_ref: (Bt, C, HW)
    x = x_ref[...]                                              # native dtype

    # Global average pool (AdaptiveAvgPool2d(1)).  Accumulate the spatial
    # reduction in f32 without materializing an f32 copy of the whole tile.
    pooled = jnp.sum(x, axis=-1, dtype=jnp.float32) * inv_hw    # (Bt, C)

    # fc1: 1x1 conv C -> C//r (weights pre-transposed in the wrapper), ReLU.
    h = jnp.dot(pooled, w1t_ref[...], preferred_element_type=jnp.float32)
    h = jnp.maximum(h + b1_ref[...], 0.0)                       # (Bt, Cr)

    # fc2: 1x1 conv C//r -> C, sigmoid.
    s = jnp.dot(h, w2t_ref[...], preferred_element_type=jnp.float32)
    s = jax.nn.sigmoid(s + b2_ref[...])                         # (Bt, C)

    # Broadcast the per-channel scale over the spatial (lane) axis and multiply
    # in the input's native dtype so the big tile never becomes an f32 temp.
    o_ref[...] = (x * s[:, :, None].astype(x.dtype)).astype(o_ref.dtype)


def se_module(x, w1, b1, w2, b2, *, vmem_budget_bytes=24 * 1024 * 1024):
    """SEModule forward.  x: (B, C, H, W).  Returns (B, C, H, W)."""
    B, C, H, W = x.shape
    Cr = w1.shape[0]
    HW = H * W

    # Copy-free flatten of the spatial dims (contiguous trailing-dim merge).
    x_flat = x.reshape(B, C, HW)

    # Batch tile Bt: double-buffered input + output tiles must fit the budget.
    itemsize = jnp.dtype(x.dtype).itemsize
    per_elem = 4 * C * HW * itemsize             # 2 buffers x (input + output)
    bt = max(1, min(B, vmem_budget_bytes // max(per_elem, 1)))
    if bt == B and B >= 2:
        # Prefer >= 2 grid steps (megacore sharding + DMA/compute overlap)
        # without ever exceeding the VMEM budget.
        bt = (B + 1) // 2
    while B % bt:                                # divisor of B -> no batch pad
        bt -= 1
    # TODO(synk): two-pass (pool-then-scale) tiling for C*HW tiles that exceed
    # VMEM even at bt=1.

    # Pre-transpose weights once in XLA; the kernel consumes them directly.
    w1t = jnp.transpose(w1)                      # (C, Cr)
    w2t = jnp.transpose(w2)                      # (Cr, C)
    b1_2d = b1.reshape(1, Cr)
    b2_2d = b2.reshape(1, C)

    kernel = functools.partial(_se_kernel, inv_hw=1.0 / HW)

    out = pl.pallas_call(
        kernel,
        out_shape=jax.ShapeDtypeStruct((B, C, HW), x.dtype),
        grid_spec=pltpu.PrefetchScalarGridSpec(
            num_scalar_prefetch=0,
            grid=(B // bt,),
            in_specs=[
                pl.BlockSpec((bt, C, HW), lambda i: (i, 0, 0)),   # x tile
                pl.BlockSpec((C, Cr), lambda i: (0, 0)),          # fc1 weight^T
                pl.BlockSpec((1, Cr), lambda i: (0, 0)),          # fc1 bias
                pl.BlockSpec((Cr, C), lambda i: (0, 0)),          # fc2 weight^T
                pl.BlockSpec((1, C), lambda i: (0, 0)),           # fc2 bias
            ],
            out_specs=pl.BlockSpec((bt, C, HW), lambda i: (i, 0, 0)),
        ),
        compiler_params=pltpu.CompilerParams(
            dimension_semantics=("parallel",),
            # Above the small scoped defaults (16/32 MiB) but safely below the
            # physical ceiling on every chip (64 MiB on v7x, 128 MiB v5e/v6e).
            vmem_limit_bytes=48 * 1024 * 1024,
        ),
    )(x_flat, w1t, b1_2d, w2t, b2_2d)

    return out.reshape(B, C, H, W)


def _reference(x, w1, b1, w2, b2):
    # Pure-JAX reference mirroring the PyTorch forward.
    pooled = jnp.mean(x, axis=(2, 3))                        # (B, C)
    h = jnp.maximum(pooled @ w1.T + b1, 0.0)                 # (B, Cr)
    s = jax.nn.sigmoid(h @ w2.T + b2)                        # (B, C)
    return x * s[:, :, None, None]


if __name__ == "__main__":
    # Small shapes consistent with SEModule(channels=16, reduction=4).
    B, C, H, W = 2, 16, 16, 16
    reduction = 4
    Cr = C // reduction

    key = jax.random.PRNGKey(0)
    kx, kw1, kb1, kw2, kb2 = jax.random.split(key, 5)

    x = jax.random.normal(kx, (B, C, H, W), dtype=jnp.float32)
    # Deterministic synthetic parameters (Conv2d 1x1 weights squeezed to 2D).
    w1 = jax.random.normal(kw1, (Cr, C), dtype=jnp.float32) * 0.1
    b1 = jax.random.normal(kb1, (Cr,), dtype=jnp.float32) * 0.1
    w2 = jax.random.normal(kw2, (C, Cr), dtype=jnp.float32) * 0.1
    b2 = jax.random.normal(kb2, (C,), dtype=jnp.float32) * 0.1

    out = se_module(x, w1, b1, w2, b2)
    out = jax.block_until_ready(out)

    ref = _reference(x, w1, b1, w2, b2)
    assert out.shape == (B, C, H, W)
    assert jnp.allclose(out, ref, atol=1e-5, rtol=1e-5), "mismatch vs reference"

    print("KERNEL_OK")
</pallas_src>

<mosaic_0001>
module attributes {stable_mosaic.version = 11 : i64} {
  func.func @_se_kernel(%arg0: i32, %arg1: memref<1x16x256xf32, #tpu.memory_space<vmem>>, %arg2: memref<16x4xf32, #tpu.memory_space<vmem>>, %arg3: memref<1x4xf32, #tpu.memory_space<vmem>>, %arg4: memref<4x16xf32, #tpu.memory_space<vmem>>, %arg5: memref<1x16xf32, #tpu.memory_space<vmem>>, %arg6: memref<1x16x256xf32, #tpu.memory_space<vmem>>) attributes {dimension_semantics = [#tpu.dimension_semantics<parallel>], iteration_bounds = array<i64: 2>, scalar_prefetch = 0 : i64, scratch_operands = 0 : i64, tpu.core_type = #tpu.core_type<tc>, window_params = [{transform_indices = @transform_0, window_bounds = array<i64: 1, 16, 256>}, {pipeline_mode = #tpu.pipeline_mode<synchronous>, transform_indices = @transform_1, window_bounds = array<i64: 16, 4>}, {pipeline_mode = #tpu.pipeline_mode<synchronous>, transform_indices = @transform_2, window_bounds = array<i64: 1, 4>}, {pipeline_mode = #tpu.pipeline_mode<synchronous>, transform_indices = @transform_3, window_bounds = array<i64: 4, 16>}, {pipeline_mode = #tpu.pipeline_mode<synchronous>, transform_indices = @transform_4, window_bounds = array<i64: 1, 16>}, {transform_indices = @transform_5, window_bounds = array<i64: 1, 16, 256>}]} {
    %c0 = arith.constant 0 : index
    %c0_0 = arith.constant 0 : index
    %c0_1 = arith.constant 0 : index
    %0 = vector.load %arg1[%c0, %c0_0, %c0_1] : memref<1x16x256xf32, #tpu.memory_space<vmem>>, vector<1x16x256xf32>
    %cst = arith.constant dense<0.000000e+00> : vector<1x16xf32>
    %1 = vector.multi_reduction <add>, %0, %cst [2] : vector<1x16x256xf32> to vector<1x16xf32>
    %cst_2 = arith.constant 3.906250e-03 : f32
    %2 = vector.broadcast %cst_2 : f32 to vector<1x16xf32>
    %3 = arith.mulf %1, %2 : vector<1x16xf32>
    %c0_3 = arith.constant 0 : index
    %c0_4 = arith.constant 0 : index
    %4 = vector.load %arg2[%c0_3, %c0_4] : memref<16x4xf32, #tpu.memory_space<vmem>>, vector<16x4xf32>
    %cst_5 = arith.constant dense<0.000000e+00> : vector<1x4xf32>
    %5 = tpu.matmul %3, %4, %cst_5 {dimension_numbers = #tpu.dot_dimension_numbers<[1], [0], [0], [1], [0, 0, 1, 1], [], []>} : vector<1x16xf32>, vector<16x4xf32>, vector<1x4xf32> -> vector<1x4xf32>
    %c0_6 = arith.constant 0 : index
    %c0_7 = arith.constant 0 : index
    %6 = vector.load %arg3[%c0_6, %c0_7] : memref<1x4xf32, #tpu.memory_space<vmem>>, vector<1x4xf32>
    %7 = arith.addf %5, %6 : vector<1x4xf32>
    %cst_8 = arith.constant 0.000000e+00 : f32
    %8 = vector.broadcast %cst_8 : f32 to vector<1x4xf32>
    %9 = arith.maximumf %7, %8 : vector<1x4xf32>
    %c0_9 = arith.constant 0 : index
    %c0_10 = arith.constant 0 : index
    %10 = vector.load %arg4[%c0_9, %c0_10] : memref<4x16xf32, #tpu.memory_space<vmem>>, vector<4x16xf32>
    %cst_11 = arith.constant dense<0.000000e+00> : vector<1x16xf32>
    %11 = tpu.matmul %9, %10, %cst_11 {dimension_numbers = #tpu.dot_dimension_numbers<[1], [0], [0], [1], [0, 0, 1, 1], [], []>} : vector<1x4xf32>, vector<4x16xf32>, vector<1x16xf32> -> vector<1x16xf32>
    %c0_12 = arith.constant 0 : index
    %c0_13 = arith.constant 0 : index
    %12 = vector.load %arg5[%c0_12, %c0_13] : memref<1x16xf32, #tpu.memory_space<vmem>>, vector<1x16xf32>
    %13 = arith.addf %11, %12 : vector<1x16xf32>
    %14 = arith.negf %13 : vector<1x16xf32>
    %15 = math.exp %14 : vector<1x16xf32>
    %cst_14 = arith.constant 1.000000e+00 : f32
    %16 = vector.broadcast %cst_14 : f32 to vector<1x16xf32>
    %17 = arith.addf %16, %15 : vector<1x16xf32>
    %18 = arith.divf %16, %17 : vector<1x16xf32>
    %19 = vector.shape_cast %18 : vector<1x16xf32> to vector<1x16x1xf32>
    %20 = vector.broadcast %19 : vector<1x16x1xf32> to vector<1x16x256xf32>
    %21 = arith.mulf %0, %20 : vector<1x16x256xf32>
    %c0_15 = arith.constant 0 : index
    %c0_16 = arith.constant 0 : index
    %c0_17 = arith.constant 0 : index
    %22 = vector.load %arg6[%c0_15, %c0_16, %c0_17] : memref<1x16x256xf32, #tpu.memory_space<vmem>>, vector<1x16x256xf32>
    tpu.vector_store %arg6[%c0_15, %c0_16, %c0_17], %21 {strides = array<i32>} : memref<1x16x256xf32, #tpu.memory_space<vmem>>, vector<1x16x256xf32>,
    return
  }
  func.func @transform_0(%arg0: i32) -> (i32, i32, i32) {
    %c0_i32 = arith.constant 0 : i32
    %c0_i32_0 = arith.constant 0 : i32
    %c0_i32_1 = arith.constant 0 : i32
    return %arg0, %c0_i32, %c0_i32_0 : i32, i32, i32
  }
  func.func @transform_1(%arg0: i32) -> (i32, i32) {
    %c0_i32 = arith.constant 0 : i32
    %c0_i32_0 = arith.constant 0 : i32
    %c0_i32_1 = arith.constant 0 : i32
    return %c0_i32, %c0_i32_0 : i32, i32
  }
  func.func @transform_2(%arg0: i32) -> (i32, i32) {
    %c0_i32 = arith.constant 0 : i32
    %c0_i32_0 = arith.constant 0 : i32
    %c0_i32_1 = arith.constant 0 : i32
    return %c0_i32, %c0_i32_0 : i32, i32
  }
  func.func @transform_3(%arg0: i32) -> (i32, i32) {
    %c0_i32 = arith.constant 0 : i32
    %c0_i32_0 = arith.constant 0 : i32
    %c0_i32_1 = arith.constant 0 : i32
    return %c0_i32, %c0_i32_0 : i32, i32
  }
  func.func @transform_4(%arg0: i32) -> (i32, i32) {
    %c0_i32 = arith.constant 0 : i32
    %c0_i32_0 = arith.constant 0 : i32
    %c0_i32_1 = arith.constant 0 : i32
    return %c0_i32, %c0_i32_0 : i32, i32
  }
  func.func @transform_5(%arg0: i32) -> (i32, i32, i32) {
    %c0_i32 = arith.constant 0 : i32
    %c0_i32_0 = arith.constant 0 : i32
    %c0_i32_1 = arith.constant 0 : i32
    return %arg0, %c0_i32, %c0_i32_0 : i32, i32, i32
  }
}

</mosaic_0001>

<bundles_post_ra>
// kernel: tpu_custom_call.1
= control target key start
LH: loop header
LB: loop body
LE: loop exit
PB: predicated region body
PF: predicated region fallthrough
CT: control target
= control target key end

     0   :  { %10 = vsyncpa [#allocation3], 0  ;;  %s823_s0 = inlined_call_operand.hbm [shape: f32[2,16,256], index: 0, kind: input, shape index: {}]   ;;  %s824_s1 = inlined_call_operand.vmem [shape: f32[16,4], index: 1, kind: input, shape index: {}]   ;;  %s825_s2 = inlined_call_operand.vmem [shape: f32[1,4], index: 2, kind: input, shape index: {}]   ;;  %s826_s3 = inlined_call_operand.vmem [shape: f32[4,16], index: 3, kind: input, shape index: {}]   ;;  %s827_s4 = inlined_call_operand.vmem [shape: f32[1,16], index: 4, kind: input, shape index: {}]   ;;  %s828_s5 = inlined_call_operand.hbm [shape: f32[2,16,256], index: 5, kind: output, shape index: {}]  }
   0x1   :  { %12 = vsyncpa [#allocation3 + $0x1], 0 }
   0x2   :  { %13 = vsyncpa [#allocation4], 0 }
   0x3   :  { %15 = vsyncpa [#allocation4 + $0x1], 0  ;;  %s661_s18 = smov 0   ;;  %s663_s19 = smov 0  }
   0x4   :  { %s665_s20 = smov 0   ;;  %s667_s21 = smov 0  }
   0x5 LB: > { %s682_s22 = sadd.s32 4294967295, %s625_s21   ;;  %s452_s23 = sadd.s32 4294967294, %s625_s21   ;;  %s625_s21 = sphi %s667_s21, %s838_s21   ;;  %s621_s20 = sphi %s665_s20, %s837_s20   ;;  %s617_s19 = sphi %s663_s19, %s836_s19   ;;  %s613_s18 = sphi %s661_s18, %s835_s18  }
   0x6   : > { %s686_s24 = sadd.s32 1, %s625_s21   ;;  %s28_s25 = sadd.s32 1, %s621_s20 }
   0x7   : > { %s25_s26 = ssub.s32 %s625_s21, %s686_s24  ;;  %p35_p0 = scmp.ne.s32.totalorder %s621_s20, %s617_s19 }
   0x8   : > { %p26_p1 = scmp.eq.s32.totalorder %s25_s26, 0  ;;  %p36_p2 = scmp.eq.s32.totalorder %s625_s21, 0 }
   0x9   : > { %p41_p3 = scmp.ne.s32.totalorder %s617_s19, %s613_s18  ;;  %p42_p4 = scmp.eq.s32.totalorder %s682_s22, 0 }
   0xa   : > { %s698_s27 = scalar_select %p26_p1, %s621_s20, %s28_s25  }
   0xb   : > { %p700_p5 = por %p36_p2, %p35_p0  ;;  %p704_p6 = por %p42_p4, %p41_p3 }
   0xc   : > { %p149_p7 = scmp.eq.s32.totalorder %s682_s22, 1  ;;  %p155_p8 = scmp.eq.s32.totalorder %s452_s23, 1 }
   0xd   : > { %p484_p10 = scmp.lt.s32.totalorder %s625_s21, 2  ;;  %s187_s7 = sand.u32 1, %s621_s20  }
   0xe   : > { %p711_p11 = por %p149_p7, %p35_p0  ;;  %p715_p12 = por %p155_p8, %p41_p3 }
   0xf   : > { %s470_s8 = sshll.u32 %s625_s21, 5  ;;  %s455_s9 = sshll.u32 %s187_s7, 5 }
  0x10   : > { %s196_s12 = scalar_lea.hbm %s823_s0, %s470_s8  ;;  %s191_s14 = scalar_lea.vmem [#allocation2], %s455_s9 }
  0x11   : > { %s197_s13 = sshll.u32 %s196_s12, 4  ;;  %s199_s15 = sshll.u32 %s191_s14, 4  ;;  %s198_s13 = int_to_ptr.hbm [resolvable:$true] %s197_s13  ;;  %s200_s15 = int_to_ptr.vmem [resolvable:$true] %s199_s15 }
  0x12   : > { %p726_p13 = pnand %p484_p10, %p700_p5  ;;  %p458_p0 = scmp.ge.s32.totalorder %s625_s21, 1 }
  0x13   : > { %p207_p1 = scmp.lt.s32.totalorder %s625_s21, 3  ;;  %s188_s17 = scalar_lea.sflag [#allocation3], %s187_s7 }
  0x14   : > { %s529_s23 = sshra.s32 %s198_s13, 4  ;;  %p533_p3 = pneg %p726_p13  ;;  %s530_s23 = int_to_ptr.hbm [resolvable:$true] %s529_s23 }
  0x15   : > { %s531_s25 = scalar_lea.hbm %s530_s23, 32  ;;  %s536_s28 = scalar_lea.hbm %s823_s0, 64 }
  0x16   : > { %p532_p2 = scmp.ne.s32.totalorder %s530_s23, %s531_s25  ;;  %p537_p5 = scmp.lt.s32.totalorder %s530_s23, %s823_s0 }
  0x17   : > { %p538_p8 = scmp.lt.s32.totalorder %s536_s28, %s531_s25 }
  0x18   : > { %p534_p4 = pnand %p533_p3, %p532_p2 }
  0x19   : > { %p539_p10 = por %p538_p8, %p537_p5 }
  0x1a   : > { %p535_p7 = pneg %p534_p4 }
  0x1c   : > { %p540_p9 = pnand %p539_p10, %p535_p7 }
  0x1e   : > { %543 = shalt.err (!%p540_p9)
}
  0x1f   : > { %s627_s7 = smov 256   ;;  %s628_s11 = smov 16  }
  0x20   : > { %479 = dma.hbm_to_vmem [thread:$0]  (!%p726_p13), %s198_s13, 512, %s200_s15, %s188_s17, %s627_s7, %s627_s7, %s628_s11  }
  0x21   : > { %p208_p2 = pnand %p458_p0, %p207_p1 }
  0x22   : > { %s747_s12 = sand.u32 (!%p208_p2), 1, %s617_s19  }
  0x23   : > { %211 = sbr.rel (%p208_p2) target bundleno = 599 (0x257), region = 40  ;;  %s459_s14 = sshll.u32 (!%p208_p2), %s747_s12, 5 }
  0x24   : > { %s214_s23 = scalar_lea.sflag (!%p208_p2), [#allocation3], %s747_s12  ;;  %s217_s25 = scalar_lea.vmem (!%p208_p2), [#allocation2], %s459_s14 }
  0x28   : > { %604 = dma.done.wait (%p704_p6), %s214_s23, 512  }
  0x29   : > { %606 = vsyncadd (%p704_p6), %s214_s23, 4294966784  ;;  %v757_v0 = vld [vmem:[%s217_s25] sm:$0xff]  ;;  %v759_v1 = vld [vmem:[%s217_s25 + $0x8] sm:$0xff]  ;;  %v262_v9 = vlaneseq  ;;  %vm267_vm0 = vcmask 130112   ;;  %vm269_vm1 = vcmask 130048   ;;  %vm299_vm2 = vcmask 1043456  }
  0x2a   : > { %v249_v2 = vadd.f32 %v759_v1, %v757_v0  ;;  %v763_v3 = vld [vmem:[%s217_s25 + $0x10] sm:$0xff]  ;;  %v765_v4 = vld [vmem:[%s217_s25 + $0x18] sm:$0xff]  ;;  %v258_v6 = vld [vmem:[%s824_s1 + $0x8] sm:$0xff]  ;;  %vm295_vm3 = vcmask 31744   ;;  %s244_s7 = scalar_lea.vmem [#allocation5], %s459_s14  ;;  %s471_s11 = sshll.u32 %s682_s22, 5 }
  0x2b   : > { %v252_v5 = vadd.f32 %v765_v4, %v763_v3  ;;  %286 = vmatpush.msra.mxu0 %v258_v6  ;;  %v257_v7 = vld [vmem:[%s824_s1] sm:$0xff]  ;;  %v263_v10 = vand.u32 127, %v262_v9  ;;  %v344_v23 = vshrl.u32 %v262_v9, 7  ;;  %s375_s13 = scalar_lea.hbm %s828_s5, %s471_s11  ;;  %s376_s15 = sshll.u32 %s244_s7, 4  ;;  %s377_s15 = int_to_ptr.vmem [resolvable:$true] %s376_s15 }
  0x2c   : > { %250 = vadd.xlane.f32.xlu0 %v249_v2  ;;  %v293_v18 = vld [vmem:[%s826_s3] sm:$0xf]  ;;  %s378_s29 = sshll.u32 %s375_s13, 4  ;;  %s364_s14 = scalar_lea.sflag [#allocation4], %s747_s12  ;;  %s379_s29 = int_to_ptr.hbm [resolvable:$true] %s378_s29 }
  0x2d   : > { %287 = vmatpush.msra.mxu0 %v257_v7  ;;  %v265_v12 = vadd.s32 4294967288, %v263_v10  ;;  %462 = vmatpush.msk.msra.mxu1 %vm299_vm2, %v293_v18  ;;  %v259_v19 = vld [vmem:[%s825_s2] sm:$0x1]  ;;  %v351_v24 = vadd.s32 8, %v344_v23  ;;  %s573_s16 = sshra.s32 %s379_s29, 4  ;;  %s579_s8 = scalar_lea.hbm %s828_s5, 64  ;;  %s574_s16 = int_to_ptr.hbm [resolvable:$true] %s573_s16 }
  0x2e   : > { %522 = vset.pattern.permute.xlu1 %v344_v23  ;;  %v294_v25 = vld [vmem:[%s827_s4] sm:$0x1]  ;;  %s575_s22 = scalar_lea.hbm %s574_s16, 32  ;;  %p580_p0 = scmp.lt.s32.totalorder %s574_s16, %s828_s5 }
  0x2f   : > { %524 = vset.pattern.permute.xlu0 %v351_v24  ;;  %p576_p6 = scmp.ne.s32.totalorder %s574_s16, %s575_s22  ;;  %p581_p1 = scmp.lt.s32.totalorder %s579_s8, %s575_s22 }
  0x31   : > { %p577_p9 = pnand %p576_p6, %p711_p11  ;;  %p582_p3 = por %p581_p1, %p580_p0 }
  0x33   : > { %p578_p13 = pneg %p577_p9 }
  0x34   : > { %253 = vadd.xlane.f32.xlu0 %v252_v5 }
  0x35   : > { %p583_p4 = pnand %p582_p3, %p578_p13 }
  0x9f   : > { %v251_v8 = vpop.xlane.xlu0 %250 }
  0xa0   : > { %v255_v11 = vmul.f32 0.00390625, %v251_v8 }
  0xa2   : > { %v264_v15 = vperm.slane %v255_v11, %v263_v10 }
  0xa7   : > { %v254_v13 = vpop.xlane.xlu0 %253 }
  0xa8   : > { %v256_v14 = vmul.f32 0.00390625, %v254_v13 }
  0xaa   : > { %v266_v16 = vperm.slane %v256_v14, %v265_v12 }
  0xac   : > { %v268_v17 = vsel %vm267_vm0, %v266_v16, %v264_v15 }
  0xad   : > { %461 = vmatmul.msk.f32.vlgmr.msra.gmra.mxu0 %vm269_vm1, %v268_v17 }
 0x12a   : > { %v289_v20 = vpop.f32.mrf.mxu0 }
 0x12b   : > { %v290_v21 = vadd.f32 %v289_v20, %v259_v19 }
 0x12d   : > { %v292_v22 = vmax.f32 %v290_v21, 0.0 }
 0x12f   : > { %463 = vmatmul.msk.f32.vlgmr.msra.gmra.mxu1 %vm295_vm3, %v292_v22 }
 0x1ac   : > { %v320_v26 = vpop.f32.mrf.mxu1 }
 0x1ad   : > { %v321_v27 = vadd.f32 %v320_v26, %v294_v25 }
 0x1af   : > { %v464_v28 = vmul.f32 -1.442695, %v321_v27 }
 0x1b1   : > { %525 = vpow2.f32 %v464_v28 }
 0x1b7   : > { %v526_v29 = vpop.eup %525 }
 0x1b8   : > { %v326_v30 = vadd.f32 1.0, %v526_v29 }
 0x1ba   : > { %527 = vrcp.f32 %v326_v30  ;;  %v338_v34 = vand.u32 2147483648, %v326_v30  ;;  %v336_v36 = vand.u32 2147483647, %v326_v30  ;;  %vm332_vm5 = vweird.f32 %v326_v30 }
 0x1bc   : > { %v339_v38 = vor.u32 1.1754944e-38, %v338_v34  ;;  %vm337_vm7 = vcmp.eq.f32.partialorder %v336_v36, 8.507059e+37 }
 0x1c0   : > { %v528_v31 = vpop.eup %527 }
 0x1c1   : > { %v328_v32 = vmul.f32 %v528_v31, %v326_v30  ;;  %vm333_vm4 = vweird.f32 %v528_v31 }
 0x1c2   : > { %vm334_vm6 = vmor %vm332_vm5, %vm333_vm4 }
 0x1c3   : > { %v329_v33 = vsub.f32 1.0, %v328_v32 }
 0x1c5   : > { %v330_v35 = vmul.f32 %v528_v31, %v329_v33 }
 0x1c7   : > { %v331_v37 = vadd.f32 %v528_v31, %v330_v35 }
 0x1c9   : > { %v335_v39 = vsel %vm334_vm6, %v528_v31, %v331_v37 }
 0x1ca   : > { %v340_v40 = vsel %vm337_vm7, %v339_v38, %v335_v39 }
 0x1cb   : > { %v342_v41 = vperm.slane %v340_v40, 0 }
 0x1cd   : > { %347 = vperm.xlu1 %522, %v342_v41  }
 0x1d5   : > { %523 = vset.pattern.permute.xlu1 %v351_v24 }
 0x1dd   : > { %353 = vperm.xlu1 %523, %v342_v41  }
 0x23f   : > { %v348_v42 = vpop.permute.xlu1 %347 }
 0x240   : > { %v355_v43 = vmul.f32 %v348_v42, %v757_v0  ;;  %v356_v44 = vmul.f32 %v348_v42, %v759_v1 }
 0x242   : > { %359 = vst [vmem:[%s244_s7] sm:$0xff] %v355_v43 }
 0x243   : > { %360 = vst [vmem:[%s244_s7 + $0x8] sm:$0xff] %v356_v44 }
 0x24f   : > { %v354_v45 = vpop.permute.xlu1 %353 }
 0x250   : > { %v357_v46 = vmul.f32 %v354_v45, %v763_v3  ;;  %v358_v47 = vmul.f32 %v354_v45, %v765_v4 }
 0x252   : > { %361 = vst [vmem:[%s244_s7 + $0x10] sm:$0xff] %v357_v46 }
 0x253   : > { %362 = vst [vmem:[%s244_s7 + $0x18] sm:$0xff] %v358_v47 }
 0x254   : > { %586 = shalt.err (!%p583_p4)
}
 0x255   : > { %s629_s12 = smov 256   ;;  %s630_s10 = smov 16  }
 0x256   : > { %474 = dma.vmem_to_hbm [thread:$0]  (%p711_p11), %s377_s15, 512, %s379_s29, %s364_s14, %s629_s12, %s629_s12, %s630_s10  }
 0x257 PF: > { %s393_s7 = sand.u32 1, %s613_s18   ;;  %p834_p7 = scmp.ge.s32.totalorder %s625_s21, 2 }
 0x258   : > { %s394_s11 = scalar_lea.sflag [#allocation4], %s393_s7 }
 0x259   : > { %p481_p5 = pnand %p834_p7, %p715_p12 }
 0x25b   : > { %p482_p8 = pneg %p481_p5 }
 0x25d   : > { %608 = dma.done.wait (%p482_p8), %s394_s11, 512  }
 0x25e   : > { %610 = vsyncadd (%p482_p8), %s394_s11, 4294966784  ;;  %p18_p10 = scmp.ge.s32.totalorder %s686_s24, 4   ;;  %s835_s18 = smov %s617_s19 }
 0x25f   : > { %s836_s19 = smov %s621_s20  ;;  %s837_s20 = smov %s698_s27 }
 0x260   : > { %s838_s21 = smov %s686_s24  ;;  %20 = sbr.rel (!%p18_p10) target bundleno = 5 (0x5), region = 85 }
 0x265   :  { %400 = vsyncpa [#allocation3], 1 }
 0x266   :  { %402 = vsyncpa [#allocation3 + $0x1], 1 }
 0x267   :  { %403 = vsyncpa [#allocation4], 1 }
 0x268   :  { %405 = vsyncpa [#allocation4 + $0x1], 1 }

</bundles_post_ra>
